<compile_context>
chip_gen: v7x
topology: tpu7x:2x2x1
jax: 0.10.0
libtpu: 0.0.40
codegen_flags: <defaults>
</compile_context>

<pallas_src>
import math
import functools

import jax
import jax.numpy as jnp
from jax import lax
from jax.experimental import pallas as pl
from jax.experimental.pallas import tpu as pltpu


# ---------------------------------------------------------------------------
# tile-size helpers (block dims must be multiples of (8,128) or the full dim)
# ---------------------------------------------------------------------------
def _pick_tile(dim, candidates):
    for c in candidates:
        if dim % c == 0:
            return c
    return dim  # full dim is always a legal block size


# ---------------------------------------------------------------------------
# Linear projection:  y = x @ W^T + b   (nn.Linear semantics, W is (out, in))
# ---------------------------------------------------------------------------
def _linear_kernel(x_ref, w_ref, b_ref, o_ref, acc_ref):
    k = pl.program_id(2)

    @pl.when(k == 0)
    def _():
        acc_ref[...] = jnp.zeros(acc_ref.shape, acc_ref.dtype)

    # contract x (tm, tk) with w (tn, tk) over the shared `tk` axis -> (tm, tn)
    acc_ref[...] += lax.dot_general(
        x_ref[...], w_ref[...],
        dimension_numbers=(((1,), (1,)), ((), ())),
        preferred_element_type=jnp.float32)

    @pl.when(k == pl.num_programs(2) - 1)
    def _():
        o_ref[...] = (acc_ref[...] + b_ref[...].astype(jnp.float32)).astype(o_ref.dtype)


def linear(x, w, b, *, compute_dtype=None):
    """x: (N, in_f); w: (out_f, in_f) PyTorch layout; b: (out_f,)."""
    n, in_f = x.shape
    out_f = w.shape[0]
    out_dtype = x.dtype
    if compute_dtype is not None:
        x = x.astype(compute_dtype)
        w = w.astype(compute_dtype)

    tm = _pick_tile(n, (256, 128, 64, 32, 16, 8))
    tn = _pick_tile(out_f, (256, 128))
    tk = _pick_tile(in_f, (512, 256, 128))
    grid = (n // tm, out_f // tn, in_f // tk)
    b2 = b.reshape(1, out_f)

    return pl.pallas_call(
        _linear_kernel,
        out_shape=jax.ShapeDtypeStruct((n, out_f), out_dtype),
        grid_spec=pltpu.PrefetchScalarGridSpec(
            num_scalar_prefetch=0,
            grid=grid,
            in_specs=[
                pl.BlockSpec((tm, tk), lambda i, j, k: (i, k)),
                pl.BlockSpec((tn, tk), lambda i, j, k: (j, k)),
                pl.BlockSpec((1, tn), lambda i, j, k: (0, j)),
            ],
            out_specs=pl.BlockSpec((tm, tn), lambda i, j, k: (i, j)),
            scratch_shapes=[pltpu.VMEM((tm, tn), jnp.float32)],
        ),
        compiler_params=pltpu.CompilerParams(
            dimension_semantics=("parallel", "parallel", "arbitrary"),
            vmem_limit_bytes=32 * 1024 * 1024),
    )(x, w, b2)


# ---------------------------------------------------------------------------
# Flash-style attention over head-packed (B, seq, H*dh) tensors.
#   grid = (B, L//tq, S//tkv); online softmax state lives in VMEM scratch and
#   is re-initialized at kv==0 / finalized+stored at kv==last ("arbitrary").
#   All heads are processed per grid step (static unrolled loop of 2-D MXU
#   matmuls), so DMAs and output stores stay lane-dense in the H*dh layout.
# ---------------------------------------------------------------------------
def _flash_attn_kernel(q_ref, k_ref, v_ref, o_ref, m_sc, l_sc, acc_sc,
                       *, n_heads, dk, dv):
    ki = pl.program_id(2)

    @pl.when(ki == 0)
    def _():
        m_sc[...] = jnp.full(m_sc.shape, -jnp.inf, m_sc.dtype)
        l_sc[...] = jnp.zeros(l_sc.shape, l_sc.dtype)
        acc_sc[...] = jnp.zeros(acc_sc.shape, acc_sc.dtype)

    q = q_ref[...]      # (tq,  H*dk)   scale already folded into Q projection
    k = k_ref[...]      # (tkv, H*dk)
    v = v_ref[...]      # (tkv, H*dv)

    for h in range(n_heads):                       # static unroll over heads
        q_h = q[:, h * dk:(h + 1) * dk]            # (tq,  dk)
        k_h = k[:, h * dk:(h + 1) * dk]            # (tkv, dk)
        v_h = v[:, h * dv:(h + 1) * dv]            # (tkv, dv)

        s = lax.dot_general(q_h, k_h, (((1,), (1,)), ((), ())),
                            preferred_element_type=jnp.float32)      # (tq, tkv)

        m_prev = m_sc[h]                                             # (tq, 1)
        m_new = jnp.maximum(m_prev, jnp.max(s, axis=-1, keepdims=True))
        alpha = jnp.exp(m_prev - m_new)
        p = jnp.exp(s - m_new)
        l_sc[h] = alpha * l_sc[h] + jnp.sum(p, axis=-1, keepdims=True)
        acc_sc[h] = alpha * acc_sc[h] + lax.dot_general(
            p.astype(v_h.dtype), v_h, (((1,), (0,)), ((), ())),
            preferred_element_type=jnp.float32)                      # (tq, dv)
        m_sc[h] = m_new

    @pl.when(ki == pl.num_programs(2) - 1)
    def _():
        outs = [acc_sc[h] * pl.reciprocal(l_sc[h], approx=True)
                for h in range(n_heads)]
        # single lane-dense store of the full (tq, H*dv) tile
        o_ref[...] = jnp.concatenate(outs, axis=-1).astype(o_ref.dtype)


def flash_attention(q, k, v, n_heads, *, compute_dtype=None):
    """q: (B, L, H*dk); k: (B, S, H*dk); v: (B, S, H*dv) -> (B, L, H*dv)."""
    B, L, dq_all = q.shape
    _, S, dv_all = v.shape
    H = n_heads
    dk = dq_all // H
    dv = dv_all // H
    out_dtype = q.dtype
    if compute_dtype is not None:
        q = q.astype(compute_dtype)
        k = k.astype(compute_dtype)
        v = v.astype(compute_dtype)

    tq = _pick_tile(L, (128, 64, 32, 16, 8))
    tkv = _pick_tile(S, (128, 64, 32, 16, 8))
    grid = (B, L // tq, S // tkv)

    kernel = functools.partial(_flash_attn_kernel, n_heads=H, dk=dk, dv=dv)
    return pl.pallas_call(
        kernel,
        out_shape=jax.ShapeDtypeStruct((B, L, dv_all), out_dtype),
        grid_spec=pltpu.PrefetchScalarGridSpec(
            num_scalar_prefetch=0,
            grid=grid,
            in_specs=[
                pl.BlockSpec((None, tq, dq_all), lambda b, qi, ki: (b, qi, 0)),
                pl.BlockSpec((None, tkv, dq_all), lambda b, qi, ki: (b, ki, 0)),
                pl.BlockSpec((None, tkv, dv_all), lambda b, qi, ki: (b, ki, 0)),
            ],
            out_specs=pl.BlockSpec((None, tq, dv_all), lambda b, qi, ki: (b, qi, 0)),
            scratch_shapes=[
                pltpu.VMEM((H, tq, 1), jnp.float32),   # running max
                pltpu.VMEM((H, tq, 1), jnp.float32),   # running sum
                pltpu.VMEM((H, tq, dv), jnp.float32),  # output accumulator
            ],
        ),
        compiler_params=pltpu.CompilerParams(
            dimension_semantics=("parallel", "parallel", "arbitrary"),
            vmem_limit_bytes=32 * 1024 * 1024),
    )(q, k, v)


# ---------------------------------------------------------------------------
# AttentionLayer forward
# ---------------------------------------------------------------------------
def attention_layer_forward(params, queries, keys, values, attn_mask, n_heads,
                            compute_dtype=None):
    """compute_dtype: optionally cast matmul operands (e.g. jnp.bfloat16 on
    v6e/v7x); accumulation and softmax state stay in f32."""
    # TODO(synk): attn_mask / causal masking not applied (FullAttention mask_flag=False case).
    del attn_mask
    B, L, d_model = queries.shape
    _, S, _ = keys.shape
    H = n_heads

    d_qk = params["wq"].shape[0]      # d_keys  * H
    d_v = params["wv"].shape[0]       # d_values * H
    dk = d_qk // H
    dv = d_v // H

    # Fold the 1/sqrt(dk) attention scale into the Q projection (weights only).
    scale = 1.0 / math.sqrt(dk)
    wq = params["wq"] * scale
    bq = params["bq"] * scale

    if (queries is keys) and (keys is values):
        # Self-attention: fused QKV projection — one pallas_call, activations
        # read once, 3x wider lane-dense output tile for the MXU.
        w_qkv = jnp.concatenate([wq, params["wk"], params["wv"]], axis=0)
        b_qkv = jnp.concatenate([bq, params["bk"], params["bv"]], axis=0)
        qkv = linear(queries.reshape(B * L, d_model), w_qkv, b_qkv,
                     compute_dtype=compute_dtype)
        q2 = qkv[:, :d_qk]
        k2 = qkv[:, d_qk:2 * d_qk]
        v2 = qkv[:, 2 * d_qk:]
    else:
        q2 = linear(queries.reshape(B * L, d_model), wq, bq,
                    compute_dtype=compute_dtype)
        k2 = linear(keys.reshape(B * S, d_model), params["wk"], params["bk"],
                    compute_dtype=compute_dtype)
        v2 = linear(values.reshape(B * S, d_model), params["wv"], params["bv"],
                    compute_dtype=compute_dtype)

    # Head-packed (B, seq, H*dh) layout end-to-end: plain reshapes, no HBM
    # transpose round trips before or after the attention kernel.
    qh = q2.reshape(B, L, d_qk)
    kh = k2.reshape(B, S, d_qk)
    vh = v2.reshape(B, S, d_v)

    ctx = flash_attention(qh, kh, vh, H, compute_dtype=compute_dtype)  # (B, L, H*dv)

    # torch's out.permute(0,2,1,3).view(B,L,-1) is already our layout.
    out = linear(ctx.reshape(B * L, d_v), params["wo"], params["bo"],
                 compute_dtype=compute_dtype)
    out = out.reshape(B, L, d_model)

    attn = None   # inner attention with output_attention=False returns None
    return out, attn


# ---------------------------------------------------------------------------
# Deterministic parameter init (PyTorch nn.Linear shapes: W (out, in), b (out,))
# ---------------------------------------------------------------------------
def init_params(key, d_model, n_heads, d_keys=None, d_values=None):
    d_keys = d_keys or d_model // n_heads
    d_values = d_values or d_model // n_heads
    ks = jax.random.split(key, 8)

    def lin_init(kw, kb, out_f, in_f):
        bound = 1.0 / math.sqrt(in_f)
        w = jax.random.uniform(kw, (out_f, in_f), jnp.float32, -bound, bound)
        b = jax.random.uniform(kb, (out_f,), jnp.float32, -bound, bound)
        return w, b

    wq, bq = lin_init(ks[0], ks[1], d_keys * n_heads, d_model)
    wk, bk = lin_init(ks[2], ks[3], d_keys * n_heads, d_model)
    wv, bv = lin_init(ks[4], ks[5], d_values * n_heads, d_model)
    wo, bo = lin_init(ks[6], ks[7], d_model, d_values * n_heads)
    return dict(wq=wq, bq=bq, wk=wk, bk=bk, wv=wv, bv=bv, wo=wo, bo=bo)


# ---------------------------------------------------------------------------
# Pure-JAX reference (mirrors the PyTorch module) for correctness checking
# ---------------------------------------------------------------------------
def reference_forward(params, queries, keys, values, n_heads):
    B, L, _ = queries.shape
    _, S, _ = keys.shape
    H = n_heads
    q = queries @ params["wq"].T + params["bq"]
    k = keys @ params["wk"].T + params["bk"]
    v = values @ params["wv"].T + params["bv"]
    dk = q.shape[-1] // H
    dv = v.shape[-1] // H
    q = q.reshape(B, L, H, dk)
    k = k.reshape(B, S, H, dk)
    v = v.reshape(B, S, H, dv)
    scores = jnp.einsum("blhe,bshe->bhls", q, k) / math.sqrt(dk)
    p = jax.nn.softmax(scores, axis=-1)
    o = jnp.einsum("bhls,bshd->blhd", p, v).reshape(B, L, H * dv)
    return o @ params["wo"].T + params["bo"]


if __name__ == "__main__":
    B, L, S, d_model, n_heads = 2, 8, 8, 32, 4

    key = jax.random.PRNGKey(0)
    kp, kx, kk, kv = jax.random.split(key, 4)
    params = init_params(kp, d_model, n_heads)

    x = jax.random.normal(kx, (B, L, d_model), jnp.float32)
    keys_in = jax.random.normal(kk, (B, S, d_model), jnp.float32)
    values_in = jax.random.normal(kv, (B, S, d_model), jnp.float32)

    # 1) self-attention: exercises the fused-QKV projection path
    out_self, attn = attention_layer_forward(params, x, x, x, None, n_heads)
    out_self = jax.block_until_ready(out_self)
    assert out_self.shape == (B, L, d_model)
    assert attn is None
    ref_self = reference_forward(params, x, x, x, n_heads)
    assert jnp.allclose(out_self, ref_self, atol=2e-2, rtol=2e-2), \
        float(jnp.max(jnp.abs(out_self - ref_self)))

    # 2) cross-attention: exercises the separate Q/K/V projection path
    out_cross, _ = attention_layer_forward(params, x, keys_in, values_in, None, n_heads)
    out_cross = jax.block_until_ready(out_cross)
    ref_cross = reference_forward(params, x, keys_in, values_in, n_heads)
    assert jnp.allclose(out_cross, ref_cross, atol=2e-2, rtol=2e-2), \
        float(jnp.max(jnp.abs(out_cross - ref_cross)))

    # 3) bf16 matmul operands (recommended on v6e/v7x), f32 accumulation/softmax
    out_bf16, _ = attention_layer_forward(params, x, keys_in, values_in, None,
                                          n_heads, compute_dtype=jnp.bfloat16)
    out_bf16 = jax.block_until_ready(out_bf16)
    assert jnp.allclose(out_bf16, ref_cross, atol=1e-1, rtol=1e-1)

    print("KERNEL_OK")
</pallas_src>

<mosaic_0001>
module attributes {stable_mosaic.version = 11 : i64} {
  func.func @_linear_kernel(%arg0: i32, %arg1: i32, %arg2: i32, %arg3: memref<16x32xf32, #tpu.memory_space<vmem>>, %arg4: memref<96x32xf32, #tpu.memory_space<vmem>>, %arg5: memref<1x96xf32, #tpu.memory_space<vmem>>, %arg6: memref<16x96xf32, #tpu.memory_space<vmem>>, %arg7: memref<16x96xf32, #tpu.memory_space<vmem>>) attributes {dimension_semantics = [#tpu.dimension_semantics<parallel>, #tpu.dimension_semantics<parallel>, #tpu.dimension_semantics<arbitrary>], iteration_bounds = array<i64: 1, 1, 1>, scalar_prefetch = 0 : i64, scratch_operands = 1 : i64, tpu.core_type = #tpu.core_type<tc>, window_params = [{transform_indices = @transform_0, window_bounds = array<i64: 16, 32>}, {transform_indices = @transform_1, window_bounds = array<i64: 96, 32>}, {transform_indices = @transform_2, window_bounds = array<i64: 1, 96>}, {transform_indices = @transform_3, window_bounds = array<i64: 16, 96>}]} {
    %c0_i32 = arith.constant 0 : i32
    %0 = arith.cmpi eq, %arg2, %c0_i32 : i32
    %1 = arith.extui %0 : i1 to i32
    %c0_i32_0 = arith.constant 0 : i32
    %2 = arith.cmpi ne, %1, %c0_i32_0 : i32
    scf.if %2 {
      %cst_10 = arith.constant 0.000000e+00 : f32
      %12 = vector.broadcast %cst_10 : f32 to vector<16x96xf32>
      %c0_11 = arith.constant 0 : index
      %c0_12 = arith.constant 0 : index
      %13 = vector.load %arg7[%c0_11, %c0_12] : memref<16x96xf32, #tpu.memory_space<vmem>>, vector<16x96xf32>
      tpu.vector_store %arg7[%c0_11, %c0_12], %12 {strides = array<i32>} : memref<16x96xf32, #tpu.memory_space<vmem>>, vector<16x96xf32>,
    } else {
    }
    %c0 = arith.constant 0 : index
    %c0_1 = arith.constant 0 : index
    %3 = vector.load %arg7[%c0, %c0_1] : memref<16x96xf32, #tpu.memory_space<vmem>>, vector<16x96xf32>
    %c0_2 = arith.constant 0 : index
    %c0_3 = arith.constant 0 : index
    %4 = vector.load %arg3[%c0_2, %c0_3] : memref<16x32xf32, #tpu.memory_space<vmem>>, vector<16x32xf32>
    %c0_4 = arith.constant 0 : index
    %c0_5 = arith.constant 0 : index
    %5 = vector.load %arg4[%c0_4, %c0_5] : memref<96x32xf32, #tpu.memory_space<vmem>>, vector<96x32xf32>
    %cst = arith.constant dense<0.000000e+00> : vector<16x96xf32>
    %6 = tpu.matmul %4, %5, %cst {dimension_numbers = #tpu.dot_dimension_numbers<[1], [1], [0], [0], [0, 0, 1, 0], [], []>} : vector<16x32xf32>, vector<96x32xf32>, vector<16x96xf32> -> vector<16x96xf32>
    %7 = arith.addf %3, %6 : vector<16x96xf32>
    %c0_6 = arith.constant 0 : index
    %c0_7 = arith.constant 0 : index
    %8 = vector.load %arg7[%c0_6, %c0_7] : memref<16x96xf32, #tpu.memory_space<vmem>>, vector<16x96xf32>
    tpu.vector_store %arg7[%c0_6, %c0_7], %7 {strides = array<i32>} : memref<16x96xf32, #tpu.memory_space<vmem>>, vector<16x96xf32>,
    %c0_i32_8 = arith.constant 0 : i32
    %9 = arith.cmpi eq, %arg2, %c0_i32_8 : i32
    %10 = arith.extui %9 : i1 to i32
    %c0_i32_9 = arith.constant 0 : i32
    %11 = arith.cmpi ne, %10, %c0_i32_9 : i32
    scf.if %11 {
      %c0_10 = arith.constant 0 : index
      %c0_11 = arith.constant 0 : index
      %12 = vector.load %arg7[%c0_10, %c0_11] : memref<16x96xf32, #tpu.memory_space<vmem>>, vector<16x96xf32>
      %c0_12 = arith.constant 0 : index
      %c0_13 = arith.constant 0 : index
      %13 = vector.load %arg5[%c0_12, %c0_13] : memref<1x96xf32, #tpu.memory_space<vmem>>, vector<1x96xf32>
      %14 = vector.broadcast %13 : vector<1x96xf32> to vector<16x96xf32>
      %15 = arith.addf %12, %14 : vector<16x96xf32>
      %c0_14 = arith.constant 0 : index
      %c0_15 = arith.constant 0 : index
      %16 = vector.load %arg6[%c0_14, %c0_15] : memref<16x96xf32, #tpu.memory_space<vmem>>, vector<16x96xf32>
      tpu.vector_store %arg6[%c0_14, %c0_15], %15 {strides = array<i32>} : memref<16x96xf32, #tpu.memory_space<vmem>>, vector<16x96xf32>,
    } else {
    }
    return
  }
  func.func @transform_0(%arg0: i32, %arg1: i32, %arg2: i32) -> (i32, i32) {
    %c0_i32 = arith.constant 0 : i32
    return %arg0, %arg2 : i32, i32
  }
  func.func @transform_1(%arg0: i32, %arg1: i32, %arg2: i32) -> (i32, i32) {
    %c0_i32 = arith.constant 0 : i32
    return %arg1, %arg2 : i32, i32
  }
  func.func @transform_2(%arg0: i32, %arg1: i32, %arg2: i32) -> (i32, i32) {
    %c0_i32 = arith.constant 0 : i32
    %c0_i32_0 = arith.constant 0 : i32
    return %c0_i32, %arg1 : i32, i32
  }
  func.func @transform_3(%arg0: i32, %arg1: i32, %arg2: i32) -> (i32, i32) {
    %c0_i32 = arith.constant 0 : i32
    return %arg0, %arg1 : i32, i32
  }
}

</mosaic_0001>

<bundles_post_ra>
// kernel: tpu_custom_call.1
= control target key start
LH: loop header
LB: loop body
LE: loop exit
PB: predicated region body
PF: predicated region fallthrough
CT: control target
= control target key end

     0   :  { %vm38_vm0 = vcmask 261120   ;;  %vm19_vm1 = vcmask 785408   ;;  %v313_v6 = vmov 0.0   ;;  %s432_s0 = inlined_call_operand.vmem [shape: f32[16,32], index: 0, kind: input, shape index: {}]   ;;  %s433_s1 = inlined_call_operand.vmem [shape: f32[96,32], index: 1, kind: input, shape index: {}]   ;;  %s434_s2 = inlined_call_operand.vmem [shape: f32[1,96], index: 2, kind: input, shape index: {}]   ;;  %s435_s3 = inlined_call_operand.hbm [shape: f32[16,96], index: 3, kind: output, shape index: {}]  }
   0x1   :  { %v26_v0 = vld [vmem:[%s433_s1] sm:$0xff]  ;;  %v27_v1 = vld [vmem:[%s433_s1 + $0x8] sm:$0xff]  ;;  %v28_v2 = vld [vmem:[%s433_s1 + $0x10] sm:$0xff]  ;;  %21 = vst.msk [vmem:[#allocation2 + $0x8] sm:$0xff] %vm19_vm1, %v313_v6 }
   0x2   :  { %v249_v3 = vpack.c.bf16 %v27_v1, %v26_v0  ;;  %vm348_vm2 = vmpackc.low %vm38_vm0, %vm38_vm0  ;;  %v29_v5 = vld [vmem:[%s433_s1 + $0x18] sm:$0xff]  ;;  %20 = vst.msk [vmem:[#allocation2] sm:$0xff] %vm19_vm1, %v313_v6  ;;  %v24_v8 = vld [vmem:[%s432_s0] sm:$0xff] }
   0x3   :  { %v255_v7 = vpack.c.bf16 %v29_v5, %v28_v2  ;;  %246 = vmatprep.mubr.msk.f32.mxu0 %vm38_vm0, %v24_v8 }
   0x4   :  { %251 = vmatprep.subr.msk.bf16.mxu0 %vm348_vm2, %v249_v3 }
   0x5   :  { %254 = vmatpush3.bf16.xpose.msk.msra.mxu0 %vm348_vm2, %v249_v3 }
   0x6   :  { %257 = vmatprep.subr.msk.bf16.mxu0 %vm348_vm2, %v255_v7 }
   0x7   :  { %8 = vsyncpa [#allocation4], 0  ;;  %v30_v9 = vld [vmem:[%s433_s1 + $0x20] sm:$0xff]  ;;  %v31_v10 = vld [vmem:[%s433_s1 + $0x28] sm:$0xff]  ;;  %s314_s14 = smov [#allocation3]  }
   0x8   :  { %v261_v11 = vpack.c.bf16 %v31_v10, %v30_v9  ;;  %v32_v12 = vld [vmem:[%s433_s1 + $0x30] sm:$0xff]  ;;  %v33_v13 = vld [vmem:[%s433_s1 + $0x38] sm:$0xff]  ;;  %v34_v15 = vld [vmem:[%s433_s1 + $0x40] sm:$0xff]  ;;  %s182_s15 = sshll.u32 %s314_s14, 4  ;;  %s183_s15 = int_to_ptr.vmem [resolvable:$true] %s182_s15 }
   0x9   :  { %v267_v14 = vpack.c.bf16 %v33_v13, %v32_v12  ;;  %v35_v16 = vld [vmem:[%s433_s1 + $0x48] sm:$0xff]  ;;  %v36_v18 = vld [vmem:[%s433_s1 + $0x50] sm:$0xff]  ;;  %v37_v19 = vld [vmem:[%s433_s1 + $0x58] sm:$0xff]  ;;  %p294_p1 = scmp.lt.s32.totalorder %s183_s15, %s183_s15 }
   0xa   :  { %v273_v17 = vpack.c.bf16 %v35_v16, %v34_v15  ;;  %v279_v20 = vpack.c.bf16 %v37_v19, %v36_v18  ;;  %v25_v21 = vld [vmem:[%s432_s0 + $0x8] sm:$0xff]  ;;  %v22_v23 = vld [vmem:[#allocation2] sm:$0xff]  ;;  %s289_s0 = scalar_lea.vmem %s183_s15, 256 }
   0xb   :  { %v23_v22 = vld [vmem:[#allocation2 + $0x8] sm:$0xff]  ;;  %v207_v28 = vld [vmem:[%s434_s2] ss:$0 sm:$0xff]  ;;  %p290_p0 = scmp.ne.s32.totalorder %s183_s15, %s289_s0  ;;  %p295_p2 = scmp.lt.s32.totalorder %s289_s0, %s289_s0 }
   0xd   :  { %260 = vmatpush3.bf16.xpose.msk.msra.mxu0 %vm348_vm2, %v255_v7  ;;  %p296_p3 = por %p295_p2, %p294_p1 }
   0xe   :  { %263 = vmatprep.subr.msk.bf16.mxu0 %vm348_vm2, %v261_v11 }
   0xf   :  { %p297_p4 = pnand %p296_p3, %p290_p0 }
  0x15   :  { %266 = vmatpush3.bf16.xpose.msk.msra.mxu0 %vm348_vm2, %v261_v11 }
  0x16   :  { %269 = vmatprep.subr.msk.bf16.mxu0 %vm348_vm2, %v267_v14 }
  0x1d   :  { %272 = vmatpush3.bf16.xpose.msk.msra.mxu0 %vm348_vm2, %v267_v14 }
  0x1e   :  { %275 = vmatprep.subr.msk.bf16.mxu0 %vm348_vm2, %v273_v17 }
  0x25   :  { %278 = vmatpush3.bf16.xpose.msk.msra.mxu0 %vm348_vm2, %v273_v17 }
  0x26   :  { %281 = vmatprep.subr.msk.bf16.mxu0 %vm348_vm2, %v279_v20 }
  0x2d   :  { %284 = vmatpush3.bf16.xpose.msk.msra.mxu0 %vm348_vm2, %v279_v20 }
  0x34   :  { %247 = vmatmul.mubr.msk.f32.vlgmr.msra.gmra.mrb[0].mxu0 %vm38_vm0, %v25_v21 }
 0x107   :  { %v248_v24 = vpop.f32.mrb[0].mxu0 }
 0x108   :  { %v157_v25 = vadd.f32 %v248_v24, %v23_v22  ;;  %v147_v26 = vpop.f32.mrb[1].mxu0 }
 0x109   :  { %v156_v27 = vadd.f32 %v147_v26, %v22_v23 }
 0x10a   :  { %160 = vst.msk [vmem:[#allocation2 + $0x8] sm:$0xff] %vm19_vm1, %v157_v25 }
 0x10b   :  { %159 = vst.msk [vmem:[#allocation2] sm:$0xff] %vm19_vm1, %v156_v27 }
 0x111   :  { %v165_v29 = vld [vmem:[#allocation2 + $0x8] sm:$0xff] }
 0x112   :  { %v164_v30 = vld [vmem:[#allocation2] sm:$0xff]  ;;  %v174_v31 = vadd.f32 %v207_v28, %v165_v29 }
 0x113   :  { %v173_v32 = vadd.f32 %v207_v28, %v164_v30 }
 0x114   :  { %176 = vst.msk [vmem:[#allocation3 + $0x8] sm:$0xff] %vm19_vm1, %v174_v31 }
 0x115   :  { %175 = vst.msk [vmem:[#allocation3] sm:$0xff] %vm19_vm1, %v173_v32 }
 0x116   :  { %300 = shalt.err (!%p297_p4)
}
 0x117   :  { %s301_s17 = scalar_lea.hbm %s435_s3, 256 }
 0x118   :  { %p302_p5 = scmp.ne.s32.totalorder %s435_s3, %s301_s17  ;;  %p305_p6 = scmp.lt.u32.totalorder %s301_s17, %s435_s3 }
 0x11a   :  { %p307_p7 = pnand %p305_p6, %p302_p5 }
 0x11c   :  { %310 = shalt.err (!%p307_p7)
}
 0x11d   :  { %s315_s22 = smov 128   ;;  %s316_s23 = smov 8  }
 0x11e   :  { %188 = dma.vmem_to_hbm [thread:$0]  %s183_s15, 256, %s435_s3, [#allocation4], %s315_s22, %s315_s22, %s316_s23  }
 0x11f   :  { %311 = dma.done.wait [#allocation4], 256  }
 0x120   :  { %312 = vsyncadd [#allocation4], 4294967040 }
 0x121   :  { %192 = vsyncpa [#allocation4], 1 }

</bundles_post_ra>
